<compile_context>
chip_gen: v6e
topology: v6e:2x2x1
jax: 0.10.0
libtpu: 0.0.40
codegen_flags: <defaults>
</compile_context>

<pallas_src>
from functools import partial
import math

import jax
import jax.numpy as jnp
from jax import lax
from jax.experimental import pallas as pl
from jax.experimental.pallas import tpu as pltpu


def make_tuple_3d(v):
    if isinstance(v, (tuple, list)):
        assert len(v) == 3
        return tuple(int(x) for x in v)
    return (int(v),) * 3


# --------------------------------------------------------------------------------------
# Kernel bodies: roll the last two axes (H = sublanes, W = lanes) of a (tbc, td, H, W) block.
# The D roll has already been folded into the input BlockSpec index_map, so the body is just
# load + (at most) two rotations + store.
# --------------------------------------------------------------------------------------
def _roll_tail_xlu_kernel(x_ref, o_ref, *, sh, sw):
    x = x_ref[...]
    if sh:
        x = pltpu.roll(x, shift=sh, axis=x.ndim - 2)   # sublane rotate (XLU)
    if sw:
        x = pltpu.roll(x, shift=sw, axis=x.ndim - 1)   # lane rotate (XLU)
    o_ref[...] = x


def _roll_tail_concat_kernel(x_ref, o_ref, *, sh, sw):
    # Fallback for blocks whose trailing dims are not natively tiled (e.g. tiny demo volumes).
    x = x_ref[...]
    for axis, s in ((x.ndim - 2, sh), (x.ndim - 1, sw)):
        if s:
            n = x.shape[axis]
            hi = lax.slice_in_dim(x, n - s, n, axis=axis)
            lo = lax.slice_in_dim(x, 0, n - s, axis=axis)
            x = jnp.concatenate([hi, lo], axis=axis)
    o_ref[...] = x


def _largest_divisor_le(n, cap):
    """Largest divisor of n that is <= cap (and >= 1)."""
    cap = int(max(1, min(n, cap)))
    while n % cap:
        cap -= 1
    return cap


def shift3d_pallas(x, shifts):
    """jnp.roll(x, shifts, axis=(2, 3, 4)) for a (B, C, D, H, W) array with static shifts."""
    B, C, D, H, W = x.shape
    sd, sh, sw = (int(s) % dim for s, dim in zip(shifts, (D, H, W)))

    BC = B * C
    xf = x.reshape(BC, D, H, W)                       # free metadata reshape; BC never rolled
    itemsize = x.dtype.itemsize
    plane_bytes = H * W * itemsize

    # Pick a ~4 MiB block: first grow over the roll-free BC axis, then (if the whole BC fits)
    # over D, but only with a D-tile that keeps the D roll expressible as a block shuffle.
    TARGET = 4 * 1024 * 1024
    tbc = _largest_divisor_le(BC, TARGET // max(plane_bytes, 1))
    td = 1
    if tbc == BC:
        budget = TARGET // max(tbc * plane_bytes, 1)
        d_base = D if sd == 0 else math.gcd(D, sd)
        td = _largest_divisor_le(d_base, budget)
    nbc = BC // tbc
    nd = D // td
    sdb = sd // td                                    # block-level D shift (sd % td == 0)
    block_bytes = tbc * td * plane_bytes

    # XLU rotate needs natively tiled trailing dims; sublane tile scales with dtype packing.
    sublane = 8 * max(1, 4 // itemsize)
    use_xlu = (H % sublane == 0) and (W % 128 == 0)
    body = _roll_tail_xlu_kernel if use_xlu else _roll_tail_concat_kernel
    kernel = partial(body, sh=sh, sw=sw)

    # D roll done purely by DMA addressing: output block d reads input block (d - sdb) mod nd.
    def in_index_map(i, d):
        return (i, (d + (nd - sdb)) % nd, 0, 0)

    def out_index_map(i, d):
        return (i, d, 0, 0)

    # Headroom for double-buffered in + out blocks plus in-kernel roll temporaries; capped so
    # it stays comfortably inside v7x's 64 MiB physical VMEM per TensorCore.
    vmem_limit = int(min(48 * 1024 * 1024, max(32 * 1024 * 1024, 10 * block_bytes)))

    out = pl.pallas_call(
        kernel,
        out_shape=jax.ShapeDtypeStruct((BC, D, H, W), x.dtype),
        grid_spec=pl.GridSpec(
            grid=(nbc, nd),
            in_specs=[pl.BlockSpec((tbc, td, H, W), in_index_map)],
            out_specs=pl.BlockSpec((tbc, td, H, W), out_index_map),
        ),
        compiler_params=pltpu.CompilerParams(
            dimension_semantics=("parallel", "parallel"),
            vmem_limit_bytes=vmem_limit,
        ),
        cost_estimate=pl.CostEstimate(
            flops=0,
            transcendentals=0,
            bytes_accessed=2 * BC * D * plane_bytes,
        ),
    )(xf)
    return out.reshape(B, C, D, H, W)


class Shift3d:
    """JAX/Pallas port of the PyTorch Shift3d module (forward pass only)."""

    def __init__(self, kernel_size, volume_size):
        kernel_size = make_tuple_3d(kernel_size)
        self.kernel_size = kernel_size
        self.volume_size = make_tuple_3d(volume_size)
        # Mirror the PyTorch arithmetic exactly (floor division of the negated kernel size).
        self.shift_size = tuple(-k // 2 for k in kernel_size)
        self.shift_size_rev = tuple(k // 2 for k in kernel_size)

    def __call__(self, x, reversed: bool = False):
        shifts = self.shift_size_rev if reversed else self.shift_size
        return shift3d_pallas(x, shifts)


if __name__ == "__main__":
    key = jax.random.PRNGKey(0)

    # Case 1: small, lane-sparse volume (W < 128) -> concat fallback + td=gcd(D,sd) D-blocking.
    # Case 2: (8,128)-aligned volume              -> XLU pltpu.roll path + td>1 D-blocking.
    # Case 3: kernel_size[0] == 1 (sd == 0)       -> whole-D block, roll purely H/W in-kernel.
    cases = [
        dict(B=2, C=4, D=8, H=16, W=16, kernel_size=3),
        dict(B=2, C=4, D=4, H=8, W=128, kernel_size=(3, 5, 7)),
        dict(B=2, C=4, D=4, H=8, W=128, kernel_size=(1, 3, 3)),
    ]

    ok = True
    for cfg in cases:
        B, C, D, H, W = cfg["B"], cfg["C"], cfg["D"], cfg["H"], cfg["W"]
        key, sub = jax.random.split(key)
        x = jax.random.normal(sub, (B, C, D, H, W), dtype=jnp.float32)

        mod = Shift3d(kernel_size=cfg["kernel_size"], volume_size=(D, H, W))

        out_fwd = jax.block_until_ready(mod(x, reversed=False))
        out_rev = jax.block_until_ready(mod(x, reversed=True))

        ref_fwd = jnp.roll(x, shift=mod.shift_size, axis=(2, 3, 4))
        ref_rev = jnp.roll(x, shift=mod.shift_size_rev, axis=(2, 3, 4))
        ok &= bool(jnp.array_equal(out_fwd, ref_fwd))
        ok &= bool(jnp.array_equal(out_rev, ref_rev))

    assert ok, "Shift3d Pallas kernel mismatch vs jnp.roll reference"
    print("KERNEL_OK")
</pallas_src>

<mosaic_0001>
module attributes {stable_mosaic.version = 11 : i64} {
  func.func @_roll_tail_concat_kernel(%arg0: i32, %arg1: i32, %arg2: memref<8x2x16x16xf32, #tpu.memory_space<vmem>>, %arg3: memref<8x2x16x16xf32, #tpu.memory_space<vmem>>) attributes {dimension_semantics = [#tpu.dimension_semantics<parallel>, #tpu.dimension_semantics<parallel>], iteration_bounds = array<i64: 1, 4>, scalar_prefetch = 0 : i64, scratch_operands = 0 : i64, tpu.core_type = #tpu.core_type<tc>, window_params = [{transform_indices = @transform_0, window_bounds = array<i64: 8, 2, 16, 16>}, {transform_indices = @transform_1, window_bounds = array<i64: 8, 2, 16, 16>}]} {
    %c0 = arith.constant 0 : index
    %c0_0 = arith.constant 0 : index
    %c0_1 = arith.constant 0 : index
    %c0_2 = arith.constant 0 : index
    %0 = vector.load %arg2[%c0, %c0_0, %c0_1, %c0_2] : memref<8x2x16x16xf32, #tpu.memory_space<vmem>>, vector<8x2x16x16xf32>
    %1 = vector.extract_strided_slice %0 {offsets = [0, 0, 2, 0], sizes = [8, 2, 14, 16], strides = [1, 1, 1, 1]} : vector<8x2x16x16xf32> to vector<8x2x14x16xf32>
    %2 = vector.extract_strided_slice %0 {offsets = [0, 0, 0, 0], sizes = [8, 2, 2, 16], strides = [1, 1, 1, 1]} : vector<8x2x16x16xf32> to vector<8x2x2x16xf32>
    %3 = tpu.concatenate %1, %2 in 2 : vector<8x2x14x16xf32>, vector<8x2x2x16xf32> -> vector<8x2x16x16xf32>
    %4 = vector.extract_strided_slice %3 {offsets = [0, 0, 0, 2], sizes = [8, 2, 16, 14], strides = [1, 1, 1, 1]} : vector<8x2x16x16xf32> to vector<8x2x16x14xf32>
    %5 = vector.extract_strided_slice %3 {offsets = [0, 0, 0, 0], sizes = [8, 2, 16, 2], strides = [1, 1, 1, 1]} : vector<8x2x16x16xf32> to vector<8x2x16x2xf32>
    %6 = tpu.concatenate %4, %5 in 3 : vector<8x2x16x14xf32>, vector<8x2x16x2xf32> -> vector<8x2x16x16xf32>
    %c0_3 = arith.constant 0 : index
    %c0_4 = arith.constant 0 : index
    %c0_5 = arith.constant 0 : index
    %c0_6 = arith.constant 0 : index
    %7 = vector.load %arg3[%c0_3, %c0_4, %c0_5, %c0_6] : memref<8x2x16x16xf32, #tpu.memory_space<vmem>>, vector<8x2x16x16xf32>
    tpu.vector_store %arg3[%c0_3, %c0_4, %c0_5, %c0_6], %6 {strides = array<i32>} : memref<8x2x16x16xf32, #tpu.memory_space<vmem>>, vector<8x2x16x16xf32>,
    return
  }
  func.func @transform_0(%arg0: i32, %arg1: i32) -> (i32, i32, i32, i32) {
    %c1_i32 = arith.constant 1 : i32
    %0 = arith.addi %arg1, %c1_i32 : i32
    %c4_i32 = arith.constant 4 : i32
    %c0_i32 = arith.constant 0 : i32
    %1 = arith.cmpi eq, %c4_i32, %c0_i32 : i32
    %c1_i32_0 = arith.constant 1 : i32
    %2 = arith.select %1, %c1_i32_0, %c4_i32 : i32
    %3 = arith.remsi %0, %2 : i32
    %c0_i32_1 = arith.constant 0 : i32
    %4 = arith.cmpi ne, %3, %c0_i32_1 : i32
    %c0_i32_2 = arith.constant 0 : i32
    %5 = arith.cmpi slt, %3, %c0_i32_2 : i32
    %c0_i32_3 = arith.constant 0 : i32
    %6 = arith.cmpi slt, %2, %c0_i32_3 : i32
    %7 = arith.xori %5, %6 : i1
    %8 = arith.andi %7, %4 : i1
    %9 = arith.addi %3, %2 : i32
    %10 = arith.select %8, %9, %3 : i32
    %c0_i32_4 = arith.constant 0 : i32
    %c0_i32_5 = arith.constant 0 : i32
    %c0_i32_6 = arith.constant 0 : i32
    return %arg0, %10, %c0_i32_4, %c0_i32_5 : i32, i32, i32, i32
  }
  func.func @transform_1(%arg0: i32, %arg1: i32) -> (i32, i32, i32, i32) {
    %c0_i32 = arith.constant 0 : i32
    %c0_i32_0 = arith.constant 0 : i32
    %c0_i32_1 = arith.constant 0 : i32
    return %arg0, %arg1, %c0_i32, %c0_i32_0 : i32, i32, i32, i32
  }
}

</mosaic_0001>

<bundles_post_ra>
// kernel: tpu_custom_call.1
= control target key start
LH: loop header
LB: loop body
LE: loop exit
PB: predicated region body
PF: predicated region fallthrough
CT: control target
= control target key end

     0   :  { %6 = vsyncpa [#allocation3], 0  ;;  %s1588_s0 = inlined_call_operand.hbm [shape: f32[8,8,16,16], index: 0, kind: input, shape index: {}]   ;;  %s1589_s1 = inlined_call_operand.hbm [shape: f32[8,8,16,16], index: 1, kind: output, shape index: {}]  }
   0x1   :  { %8 = vsyncpa [#allocation3 + $0x1], 0 }
   0x2   :  { %9 = vsyncpa [#allocation4], 0 }
   0x3   :  { %11 = vsyncpa [#allocation4 + $0x1], 0  ;;  %s1045_s6 = smov 0   ;;  %s1047_s7 = smov 0  }
   0x4   :  { %s1049_s8 = smov 0   ;;  %s1051_s9 = smov 0  }
   0x5   :  { %s1053_s10 = smov 0   ;;  %s1055_s11 = smov 0  }
   0x6   :  { %s1057_s12 = smov 0   ;;  %s1059_s13 = smov 0  }
   0x7   :  { %s1061_s14 = smov 0  }
   0x8 LB: > { %s799_s15 = sadd.s32 4294967295, %s1018_s14   ;;  %s800_s16 = sadd.s32 4294967294, %s1018_s14   ;;  %s1018_s14 = sphi %s1061_s14, %s17_s14   ;;  %s1014_s13 = sphi %s1059_s13, %s1601_s13   ;;  %s1010_s12 = sphi %s1057_s12, %s1600_s12   ;;  %s1006_s11 = sphi %s1055_s11, %s1599_s11   ;;  %s1002_s10 = sphi %s1053_s10, %s1598_s10   ;;  %s998_s9 = sphi %s1051_s9, %s1597_s9   ;;  %s994_s8 = sphi %s1049_s8, %s1596_s8   ;;  %s990_s7 = sphi %s1047_s7, %s1595_s7   ;;  %s986_s6 = sphi %s1045_s6, %s1594_s6  }
   0x9   : > { %s26_s17 = sadd.s32 1, %s1014_s13  ;;  %s64_s18 = sadd.s32 1, %s1006_s11 }
   0xa   : > { %p27_p0 = scmp.ge.s32.totalorder %s26_s17, 4  ;;  %s35_s19 = ssub.s32 0, %s26_s17 }
   0xb   : > { %p71_p1 = scmp.ne.s32.totalorder %s1006_s11, %s1002_s10  ;;  %s801_s21 = smin.u32 %s35_s19, %s26_s17 }
   0xc   : > { %s1094_s20 = scalar_select %p27_p0, 0, %s26_s17  }
   0xd   : > { %p72_p2 = scmp.eq.s32.totalorder %s1018_s14, 0  ;;  %s37_s22 = sand.u32 3, %s801_s21  }
   0xe   : > { %s46_s23 = sadd.s32 1, %s1094_s20  ;;  %p803_p4 = scmp.lt.s32.totalorder %s37_s22, 0 }
   0xf   : > { %s48_s24 = ssub.s32 0, %s46_s23  ;;  %p1098_p3 = por %p72_p2, %p71_p1 }
  0x10   : > { %s44_s26 = sadd.s32 4, %s37_s22  ;;  %s804_s27 = smin.u32 %s48_s24, %s46_s23 }
  0x11   : > { %p77_p5 = scmp.ne.s32.totalorder %s1002_s10, %s998_s9  ;;  %s1603_s26 = smov (!%p803_p4, %s44_s26), %s37_s22 }
  0x12   : > { %s50_s28 = sand.u32 3, %s804_s27   ;;  %p78_p6 = scmp.eq.s32.totalorder %s799_s15, 0 }
  0x13   : > { %s88_s29 = ssub.s32 %s1014_s13, %s1094_s20  ;;  %p806_p9 = scmp.lt.s32.totalorder %s50_s28, 0 }
  0x14   : > { %p1107_p7 = por %p78_p6, %p77_p5  ;;  %p90_p8 = scmp.eq.s32.totalorder %s88_s29, 0 }
  0x15   : > { %s57_s2 = sadd.s32 4, %s50_s28  ;;  %s92_s3 = sadd.s32 1, %s994_s8 }
  0x16   : > { %p102_p10 = scmp.ne.s32.totalorder %s994_s8, %s990_s7  ;;  %s1605_s2 = smov (!%p806_p9, %s57_s2), %s50_s28 }
  0x17   : > { %s1115_s4 = scalar_select %p90_p8, %s994_s8, %s92_s3  }
  0x18   : > { %s60_s5 = ssub.s32 %s1603_s26, %s1605_s2  ;;  %p103_p11 = scmp.eq.s32.totalorder %s799_s15, 3 }
  0x19   : > { %p62_p12 = scmp.eq.s32.totalorder %s60_s5, 0  ;;  %p108_p13 = scmp.ne.s32.totalorder %s990_s7, %s986_s6 }
  0x1a   : > { %p1121_p0 = por %p103_p11, %p102_p10  ;;  %p109_p1 = scmp.eq.s32.totalorder %s800_s16, 3 }
  0x1b   : > { %s1130_s17 = scalar_select %p62_p12, %s1006_s11, %s64_s18  }
  0x1c   : > { %p1132_p2 = por %p109_p1, %p108_p13  ;;  %p808_p4 = scmp.ge.s32.totalorder %s1018_s14, 4 }
  0x1e   : > { %125 = sbr.rel (%p808_p4) target bundleno = 48 (0x30), region = 16 }
  0x23   : > { %s129_s15 = sand.u32 1, %s1006_s11   ;;  %s828_s21 = sshll.u32 %s1603_s26, 9 }
  0x24   : > { %s809_s16 = sshll.u32 %s129_s15, 8  ;;  %s156_s23 = scalar_lea.hbm %s1588_s0, %s828_s21 }
  0x25   : > { %s831_s24 = scalar_select %p1098_p3, [#allocation0], [#allocation10] }
  0x26   : > { %s133_s27 = scalar_lea.vmem [#allocation2], %s809_s16  ;;  %s1020_s2 = smov 2048  }
  0x27   : > { %s169_s28 = sshll.u32 %s133_s27, 4  ;;  %s161_s29 = sld [smem:[%s831_s24]]   ;;  %s170_s28 = int_to_ptr.vmem [resolvable:$true] %s169_s28 }
  0x28   : > { %832 = sst [smem:[#allocation7]] (%p1098_p3), %s1020_s2  ;;  %s1021_s3 = smov 512  }
  0x29   : > { %833 = sst [smem:[#allocation7 + $0x1]] (%p1098_p3), %s1021_s3  ;;  %s1022_s26 = smov 4  }
  0x2a   : > { %834 = sst [smem:[#allocation7 + $0x2]] (%p1098_p3), %s1022_s26  ;;  %s1023_s5 = smov 128  }
  0x2b   : > { %835 = sst [smem:[#allocation7 + $0x3]] (%p1098_p3), %s1023_s5  ;;  %s1024_s16 = smov 8  }
  0x2c   : > { %836 = sst [smem:[#allocation7 + $0x4]] (%p1098_p3), %s1023_s5  ;;  %s130_s18 = scalar_lea.sflag [#allocation3], %s129_s15 }
  0x2d   : > { %s816_s21 = sshll.u32 %s161_s29, 26  ;;  %837 = sst [smem:[#allocation7 + $0x5]] (%p1098_p3), %s1024_s16 }
  0x2e   : > { %s817_s22 = sadd.s32 134217728, %s816_s21  ;;  %s1025_s24 = smov 131072  }
  0x2f   : > { %838 = dma.general (%p1098_p3), %s156_s23, 4096, %s170_s28, %s130_s18, %s1025_s24, [#allocation7], %s817_s22, 0  }
  0x30 PF: > { %p818_p5 = scmp.ge.s32.totalorder %s1018_s14, 1  ;;  %p190_p6 = scmp.lt.s32.totalorder %s1018_s14, 5 }
  0x32   : > { %p191_p8 = pnand %p818_p5, %p190_p6 }
  0x33   : > { %s196_s27 = sand.u32 (!%p191_p8), 1, %s1002_s10  }
  0x34   : > { %194 = sbr.rel (%p191_p8) target bundleno = 313 (0x139), region = 24  ;;  %s819_s2 = sshll.u32 (!%p191_p8), %s196_s27, 8 }
  0x35   : > { %s197_s29 = scalar_lea.sflag (!%p191_p8), [#allocation3], %s196_s27  ;;  %s1160_s3 = scalar_lea.vmem (!%p191_p8), [#allocation2], %s819_s2 }
  0x39   : > { %977 = dma.done.wait (%p1107_p7), %s197_s29, 4096  }
  0x3a   : > { %979 = vsyncadd (%p1107_p7), %s197_s29, 4294963200  ;;  %v238_v0 = vld [vmem:[%s1160_s3 + $0x10] sm:$0xff]  ;;  %v239_v1 = vld [vmem:[%s1160_s3 + $0x18] sm:$0xff]  ;;  %vm300_vm0 = vcmask 1045504   ;;  %s1026_s25 = smov 126   ;;  %s216_s30 = sand.u32 1, %s990_s7  }
  0x3b   : > { %v236_v2 = vld [vmem:[%s1160_s3] sm:$0xff]  ;;  %v304_v3 = vrot.slane %v238_v0, 2  ;;  %v305_v4 = vrot.slane %v239_v1, 2  ;;  %v237_v5 = vld [vmem:[%s1160_s3 + $0x8] sm:$0xff]  ;;  %v242_v16 = vld [vmem:[%s1160_s3 + $0x30] sm:$0xff]  ;;  %s1027_s15 = smov 14  }
  0x3c   : > { %v301_v6 = vrot.slane %v236_v2, 2  ;;  %v302_v7 = vrot.slane %v237_v5, 2  ;;  %v240_v8 = vld [vmem:[%s1160_s3 + $0x20] sm:$0xff]  ;;  %v241_v9 = vld [vmem:[%s1160_s3 + $0x28] sm:$0xff]  ;;  %v243_v17 = vld [vmem:[%s1160_s3 + $0x38] sm:$0xff]  ;;  %v310_v19 = vrot.slane %v242_v16, 2 }
  0x3d   : > { %v1173_v10 = vsel %vm300_vm0, %v304_v3, %v305_v4  ;;  %v1183_v12 = vsel %vm300_vm0, %v305_v4, %v304_v3  ;;  %v307_v13 = vrot.slane %v240_v8, 2  ;;  %v308_v14 = vrot.slane %v241_v9, 2  ;;  %v244_v22 = vld [vmem:[%s1160_s3 + $0x40] sm:$0xff]  ;;  %v245_v23 = vld [vmem:[%s1160_s3 + $0x48] sm:$0xff]  ;;  %v246_v28 = vld [vmem:[%s1160_s3 + $0x50] sm:$0xff]  ;;  %s820_s23 = sshll.u32 %s216_s30, 8 }
  0x3e   : > { %417 = vrot.lane.b32.xlu1 %v1173_v10, %s1026_s25  ;;  %v1178_v11 = vsel %vm300_vm0, %v301_v6, %v302_v7  ;;  %v1186_v15 = vsel %vm300_vm0, %v302_v7, %v301_v6  ;;  %v311_v20 = vrot.slane %v243_v17, 2  ;;  %v313_v25 = vrot.slane %v244_v22, 2  ;;  %v247_v29 = vld [vmem:[%s1160_s3 + $0x58] sm:$0xff]  ;;  %v248_v34 = vld [vmem:[%s1160_s3 + $0x60] sm:$0xff]  ;;  %v249_v35 = vld [vmem:[%s1160_s3 + $0x68] sm:$0xff]  ;;  %s1420_s28 = scalar_lea.vmem [#allocation5], %s820_s23 }
  0x3f   : > { %413 = vrot.lane.b32.xlu0 %v1178_v11, %s1026_s25  ;;  %v1195_v18 = vsel %vm300_vm0, %v308_v14, %v307_v13  ;;  %v1198_v21 = vsel %vm300_vm0, %v307_v13, %v308_v14  ;;  %v314_v26 = vrot.slane %v245_v23, 2  ;;  %v316_v31 = vrot.slane %v246_v28, 2  ;;  %v250_v40 = vld [vmem:[%s1160_s3 + $0x70] sm:$0xff]  ;;  %v251_v41 = vld [vmem:[%s1160_s3 + $0x78] sm:$0xff]  ;;  %v252_v46 = vld [vmem:[%s1160_s3 + $0x80] sm:$0xff]  ;;  %s672_s26 = scalar_lea.sflag [#allocation4], %s216_s30 }
  0x40   : > { %v1207_v24 = vsel %vm300_vm0, %v311_v20, %v310_v19  ;;  %v1210_v27 = vsel %vm300_vm0, %v310_v19, %v311_v20  ;;  %v317_v32 = vrot.slane %v247_v29, 2  ;;  %v319_v37 = vrot.slane %v248_v34, 2  ;;  %v253_v47 = vld [vmem:[%s1160_s3 + $0x88] sm:$0xff]  ;;  %v254_v52 = vld [vmem:[%s1160_s3 + $0x90] sm:$0xff]  ;;  %v255_v53 = vld [vmem:[%s1160_s3 + $0x98] sm:$0xff] }
  0x41   : > { %v1219_v30 = vsel %vm300_vm0, %v314_v26, %v313_v25  ;;  %v1222_v33 = vsel %vm300_vm0, %v313_v25, %v314_v26  ;;  %v320_v38 = vrot.slane %v249_v35, 2  ;;  %v322_v43 = vrot.slane %v250_v40, 2  ;;  %v256_v58 = vld [vmem:[%s1160_s3 + $0xa0] sm:$0xff]  ;;  %v257_v59 = vld [vmem:[%s1160_s3 + $0xa8] sm:$0xff]  ;;  %v258_v0 = vld [vmem:[%s1160_s3 + $0xb0] sm:$0xff] }
  0x42   : > { %419 = vrot.lane.b32.xlu1 %v1183_v12, %s1026_s25  ;;  %v1231_v36 = vsel %vm300_vm0, %v317_v32, %v316_v31  ;;  %v1234_v39 = vsel %vm300_vm0, %v316_v31, %v317_v32  ;;  %v323_v44 = vrot.slane %v251_v41, 2  ;;  %v325_v49 = vrot.slane %v252_v46, 2  ;;  %v259_v1 = vld [vmem:[%s1160_s3 + $0xb8] sm:$0xff]  ;;  %v260_v6 = vld [vmem:[%s1160_s3 + $0xc0] sm:$0xff]  ;;  %v261_v7 = vld [vmem:[%s1160_s3 + $0xc8] sm:$0xff] }
  0x43   : > { %415 = vrot.lane.b32.xlu0 %v1186_v15, %s1026_s25  ;;  %v1243_v42 = vsel %vm300_vm0, %v320_v38, %v319_v37  ;;  %v1246_v45 = vsel %vm300_vm0, %v319_v37, %v320_v38  ;;  %v326_v50 = vrot.slane %v253_v47, 2  ;;  %v328_v55 = vrot.slane %v254_v52, 2  ;;  %v262_v16 = vld [vmem:[%s1160_s3 + $0xd0] sm:$0xff]  ;;  %v263_v17 = vld [vmem:[%s1160_s3 + $0xd8] sm:$0xff]  ;;  %v264_v25 = vld [vmem:[%s1160_s3 + $0xe0] sm:$0xff] }
  0x44   : > { %v1255_v48 = vsel %vm300_vm0, %v323_v44, %v322_v43  ;;  %v1258_v51 = vsel %vm300_vm0, %v322_v43, %v323_v44  ;;  %v329_v56 = vrot.slane %v255_v53, 2  ;;  %v331_v61 = vrot.slane %v256_v58, 2  ;;  %v265_v26 = vld [vmem:[%s1160_s3 + $0xe8] sm:$0xff]  ;;  %v266_v34 = vld [vmem:[%s1160_s3 + $0xf0] sm:$0xff]  ;;  %v267_v35 = vld [vmem:[%s1160_s3 + $0xf8] sm:$0xff] }
  0x45   : > { %v1267_v54 = vsel %vm300_vm0, %v326_v50, %v325_v49  ;;  %v1270_v57 = vsel %vm300_vm0, %v325_v49, %v326_v50  ;;  %v332_v62 = vrot.slane %v257_v59, 2  ;;  %v334_v3 = vrot.slane %v258_v0, 2 }
  0x46   : > { %423 = vrot.lane.b32.xlu1 %v1195_v18, %s1026_s25  ;;  %v1279_v60 = vsel %vm300_vm0, %v329_v56, %v328_v55  ;;  %v1282_v63 = vsel %vm300_vm0, %v328_v55, %v329_v56  ;;  %v335_v4 = vrot.slane %v259_v1, 2  ;;  %v337_v9 = vrot.slane %v260_v6, 2 }
  0x47   : > { %421 = vrot.lane.b32.xlu0 %v1198_v21, %s1026_s25  ;;  %v1291_v2 = vsel %vm300_vm0, %v332_v62, %v331_v61  ;;  %v333_v5 = vsel %vm300_vm0, %v331_v61, %v332_v62  ;;  %v338_v13 = vrot.slane %v261_v7, 2  ;;  %v340_v20 = vrot.slane %v262_v16, 2 }
  0x48   : > { %v392_v8 = vsel %vm300_vm0, %v335_v4, %v334_v3  ;;  %v336_v14 = vsel %vm300_vm0, %v334_v3, %v335_v4  ;;  %v341_v22 = vrot.slane %v263_v17, 2  ;;  %v343_v29 = vrot.slane %v264_v25, 2 }
  0x49   : > { %v393_v19 = vsel %vm300_vm0, %v338_v13, %v337_v9  ;;  %v339_v23 = vsel %vm300_vm0, %v337_v9, %v338_v13  ;;  %v344_v31 = vrot.slane %v265_v26, 2  ;;  %v346_v38 = vrot.slane %v266_v34, 2 }
  0x4a   : > { %427 = vrot.lane.b32.xlu1 %v1207_v24, %s1026_s25  ;;  %v394_v28 = vsel %vm300_vm0, %v341_v22, %v340_v20  ;;  %v342_v32 = vsel %vm300_vm0, %v340_v20, %v341_v22  ;;  %v347_v40 = vrot.slane %v267_v35, 2  ;;  %vm605_vm1 = vcmask 113664  }
  0x4b   : > { %425 = vrot.lane.b32.xlu0 %v1210_v27, %s1026_s25  ;;  %v395_v37 = vsel %vm300_vm0, %v344_v31, %v343_v29  ;;  %v345_v41 = vsel %vm300_vm0, %v343_v29, %v344_v31  ;;  %vm638_vm2 = vcmask 130048  }
  0x4c   : > { %v396_v43 = vsel %vm300_vm0, %v347_v40, %v346_v38  ;;  %v348_v44 = vsel %vm300_vm0, %v346_v38, %v347_v40 }
  0x4e   : > { %431 = vrot.lane.b32.xlu1 %v1219_v30, %s1026_s25 }
  0x4f   : > { %429 = vrot.lane.b32.xlu0 %v1222_v33, %s1026_s25 }
  0x52   : > { %435 = vrot.lane.b32.xlu1 %v1231_v36, %s1026_s25 }
  0x53   : > { %433 = vrot.lane.b32.xlu0 %v1234_v39, %s1026_s25 }
  0x56   : > { %439 = vrot.lane.b32.xlu1 %v1243_v42, %s1026_s25 }
  0x57   : > { %437 = vrot.lane.b32.xlu0 %v1246_v45, %s1026_s25 }
  0x5a   : > { %443 = vrot.lane.b32.xlu1 %v1255_v48, %s1026_s25 }
  0x5b   : > { %441 = vrot.lane.b32.xlu0 %v1258_v51, %s1026_s25 }
  0x5e   : > { %447 = vrot.lane.b32.xlu1 %v1267_v54, %s1026_s25 }
  0x5f   : > { %445 = vrot.lane.b32.xlu0 %v1270_v57, %s1026_s25 }
  0x62   : > { %451 = vrot.lane.b32.xlu1 %v1279_v60, %s1026_s25 }
  0x63   : > { %449 = vrot.lane.b32.xlu0 %v1282_v63, %s1026_s25 }
  0x66   : > { %455 = vrot.lane.b32.xlu1 %v1291_v2, %s1026_s25 }
  0x67   : > { %453 = vrot.lane.b32.xlu0 %v333_v5, %s1026_s25 }
  0x6a   : > { %459 = vrot.lane.b32.xlu1 %v392_v8, %s1026_s25 }
  0x6b   : > { %457 = vrot.lane.b32.xlu0 %v336_v14, %s1026_s25 }
  0x6e   : > { %463 = vrot.lane.b32.xlu1 %v393_v19, %s1026_s25 }
  0x6f   : > { %461 = vrot.lane.b32.xlu0 %v339_v23, %s1026_s25 }
  0x72   : > { %467 = vrot.lane.b32.xlu1 %v394_v28, %s1026_s25 }
  0x73   : > { %465 = vrot.lane.b32.xlu0 %v342_v32, %s1026_s25 }
  0x76   : > { %471 = vrot.lane.b32.xlu1 %v395_v37, %s1026_s25 }
  0x77   : > { %469 = vrot.lane.b32.xlu0 %v345_v41, %s1026_s25 }
  0x7a   : > { %475 = vrot.lane.b32.xlu1 %v396_v43, %s1026_s25 }
  0x7b   : > { %473 = vrot.lane.b32.xlu0 %v348_v44, %s1026_s25 }
  0x7e   : > { %511 = vrot.lane.b32.xlu1 %v1186_v15, %s1027_s15 }
  0x7f   : > { %509 = vrot.lane.b32.xlu0 %v1178_v11, %s1027_s15 }
  0x82   : > { %515 = vrot.lane.b32.xlu1 %v1183_v12, %s1027_s15 }
  0x83   : > { %513 = vrot.lane.b32.xlu0 %v1173_v10, %s1027_s15 }
  0x86   : > { %519 = vrot.lane.b32.xlu1 %v1195_v18, %s1027_s15 }
  0x87   : > { %517 = vrot.lane.b32.xlu0 %v1198_v21, %s1027_s15 }
  0x8a   : > { %523 = vrot.lane.b32.xlu1 %v1207_v24, %s1027_s15 }
  0x8b   : > { %521 = vrot.lane.b32.xlu0 %v1210_v27, %s1027_s15 }
  0x8e   : > { %527 = vrot.lane.b32.xlu1 %v1219_v30, %s1027_s15 }
  0x8f   : > { %525 = vrot.lane.b32.xlu0 %v1222_v33, %s1027_s15 }
  0x92   : > { %531 = vrot.lane.b32.xlu1 %v1231_v36, %s1027_s15 }
  0x93   : > { %529 = vrot.lane.b32.xlu0 %v1234_v39, %s1027_s15 }
  0x96   : > { %535 = vrot.lane.b32.xlu1 %v1243_v42, %s1027_s15 }
  0x97   : > { %533 = vrot.lane.b32.xlu0 %v1246_v45, %s1027_s15 }
  0x9a   : > { %539 = vrot.lane.b32.xlu1 %v1255_v48, %s1027_s15 }
  0x9b   : > { %537 = vrot.lane.b32.xlu0 %v1258_v51, %s1027_s15 }
  0x9e   : > { %543 = vrot.lane.b32.xlu1 %v1267_v54, %s1027_s15 }
  0x9f   : > { %541 = vrot.lane.b32.xlu0 %v1270_v57, %s1027_s15 }
  0xa2   : > { %547 = vrot.lane.b32.xlu1 %v1279_v60, %s1027_s15 }
  0xa3   : > { %545 = vrot.lane.b32.xlu0 %v1282_v63, %s1027_s15 }
  0xa6   : > { %551 = vrot.lane.b32.xlu1 %v1291_v2, %s1027_s15 }
  0xa7   : > { %549 = vrot.lane.b32.xlu0 %v333_v5, %s1027_s15 }
  0xaa   : > { %555 = vrot.lane.b32.xlu1 %v392_v8, %s1027_s15 }
  0xab   : > { %553 = vrot.lane.b32.xlu0 %v336_v14, %s1027_s15 }
  0xae   : > { %559 = vrot.lane.b32.xlu1 %v393_v19, %s1027_s15 }
  0xaf   : > { %557 = vrot.lane.b32.xlu0 %v339_v23, %s1027_s15 }
  0xb0   : > { %v418_v10 = vpop.permute.xlu1 %417 }
  0xb1   : > { %v414_v11 = vpop.permute.xlu0 %413 }
  0xb2   : > { %563 = vrot.lane.b32.xlu1 %v394_v28, %s1027_s15 }
  0xb3   : > { %561 = vrot.lane.b32.xlu0 %v342_v32, %s1027_s15 }
  0xb4   : > { %v420_v12 = vpop.permute.xlu1 %419 }
  0xb5   : > { %v416_v15 = vpop.permute.xlu0 %415 }
  0xb6   : > { %567 = vrot.lane.b32.xlu1 %v395_v37, %s1027_s15 }
  0xb7   : > { %565 = vrot.lane.b32.xlu0 %v345_v41, %s1027_s15 }
  0xb8   : > { %v424_v18 = vpop.permute.xlu1 %423 }
  0xb9   : > { %v422_v21 = vpop.permute.xlu0 %421 }
  0xba   : > { %571 = vrot.lane.b32.xlu1 %v396_v43, %s1027_s15 }
  0xbb   : > { %569 = vrot.lane.b32.xlu0 %v348_v44, %s1027_s15 }
  0xbc   : > { %v428_v24 = vpop.permute.xlu1 %427 }
  0xbd   : > { %v426_v27 = vpop.permute.xlu0 %425 }
  0xc0   : > { %v432_v30 = vpop.permute.xlu1 %431 }
  0xc1   : > { %v430_v33 = vpop.permute.xlu0 %429 }
  0xc4   : > { %v436_v36 = vpop.permute.xlu1 %435 }
  0xc5   : > { %v434_v39 = vpop.permute.xlu0 %433 }
  0xc8   : > { %v440_v42 = vpop.permute.xlu1 %439 }
  0xc9   : > { %v1379_v45 = vpop.permute.xlu0 %437 }
  0xcc   : > { %v1381_v46 = vpop.permute.xlu1 %443 }
  0xcd   : > { %v1383_v47 = vpop.permute.xlu0 %441 }
  0xd0   : > { %v1385_v48 = vpop.permute.xlu1 %447 }
  0xd1   : > { %v1387_v49 = vpop.permute.xlu0 %445 }
  0xd4   : > { %v1389_v50 = vpop.permute.xlu1 %451 }
  0xd5   : > { %v1391_v51 = vpop.permute.xlu0 %449 }
  0xd8   : > { %v1393_v52 = vpop.permute.xlu1 %455 }
  0xd9   : > { %v1395_v53 = vpop.permute.xlu0 %453 }
  0xdc   : > { %v1397_v54 = vpop.permute.xlu1 %459 }
  0xdd   : > { %v1399_v55 = vpop.permute.xlu0 %457 }
  0xe0   : > { %v1401_v56 = vpop.permute.xlu1 %463 }
  0xe1   : > { %v1403_v57 = vpop.permute.xlu0 %461 }
  0xe4   : > { %v1405_v58 = vpop.permute.xlu1 %467 }
  0xe5   : > { %v1407_v59 = vpop.permute.xlu0 %465 }
  0xe8   : > { %v1409_v60 = vpop.permute.xlu1 %471 }
  0xe9   : > { %v1411_v61 = vpop.permute.xlu0 %469 }
  0xec   : > { %v1413_v62 = vpop.permute.xlu1 %475 }
  0xed   : > { %v1417_v63 = vpop.permute.xlu0 %473 }
  0xf0   : > { %v512_v0 = vpop.permute.xlu1 %511 }
  0xf1   : > { %v607_v1 = vsel %vm605_vm1, %v416_v15, %v512_v0  ;;  %v510_v2 = vpop.permute.xlu0 %509 }
  0xf2   : > { %640 = vst.msk [vmem:[%s1420_s28 + $0x8] sm:$0xff] %vm638_vm2, %v607_v1  ;;  %v606_v3 = vsel %vm605_vm1, %v414_v11, %v510_v2 }
  0xf3   : > { %639 = vst.msk [vmem:[%s1420_s28] sm:$0xff] %vm638_vm2, %v606_v3 }
  0xf4   : > { %v516_v4 = vpop.permute.xlu1 %515 }
  0xf5   : > { %v609_v5 = vsel %vm605_vm1, %v420_v12, %v516_v4  ;;  %v514_v6 = vpop.permute.xlu0 %513 }
  0xf6   : > { %642 = vst.msk [vmem:[%s1420_s28 + $0x18] sm:$0xff] %vm638_vm2, %v609_v5  ;;  %v608_v7 = vsel %vm605_vm1, %v418_v10, %v514_v6 }
  0xf7   : > { %641 = vst.msk [vmem:[%s1420_s28 + $0x10] sm:$0xff] %vm638_vm2, %v608_v7 }
  0xf8   : > { %v520_v8 = vpop.permute.xlu1 %519 }
  0xf9   : > { %v611_v9 = vsel %vm605_vm1, %v424_v18, %v520_v8  ;;  %v518_v13 = vpop.permute.xlu0 %517 }
  0xfa   : > { %644 = vst.msk [vmem:[%s1420_s28 + $0x28] sm:$0xff] %vm638_vm2, %v611_v9  ;;  %v610_v14 = vsel %vm605_vm1, %v422_v21, %v518_v13 }
  0xfb   : > { %643 = vst.msk [vmem:[%s1420_s28 + $0x20] sm:$0xff] %vm638_vm2, %v610_v14 }
  0xfc   : > { %v524_v16 = vpop.permute.xlu1 %523 }
  0xfd   : > { %v613_v17 = vsel %vm605_vm1, %v428_v24, %v524_v16  ;;  %v522_v19 = vpop.permute.xlu0 %521 }
  0xfe   : > { %646 = vst.msk [vmem:[%s1420_s28 + $0x38] sm:$0xff] %vm638_vm2, %v613_v17  ;;  %v612_v20 = vsel %vm605_vm1, %v426_v27, %v522_v19 }
  0xff   : > { %645 = vst.msk [vmem:[%s1420_s28 + $0x30] sm:$0xff] %vm638_vm2, %v612_v20 }
 0x100   : > { %v528_v22 = vpop.permute.xlu1 %527 }
 0x101   : > { %v615_v23 = vsel %vm605_vm1, %v432_v30, %v528_v22  ;;  %v526_v25 = vpop.permute.xlu0 %525 }
 0x102   : > { %648 = vst.msk [vmem:[%s1420_s28 + $0x48] sm:$0xff] %vm638_vm2, %v615_v23  ;;  %v614_v26 = vsel %vm605_vm1, %v430_v33, %v526_v25 }
 0x103   : > { %647 = vst.msk [vmem:[%s1420_s28 + $0x40] sm:$0xff] %vm638_vm2, %v614_v26 }
 0x104   : > { %v532_v28 = vpop.permute.xlu1 %531 }
 0x105   : > { %v617_v29 = vsel %vm605_vm1, %v436_v36, %v532_v28  ;;  %v530_v31 = vpop.permute.xlu0 %529 }
 0x106   : > { %650 = vst.msk [vmem:[%s1420_s28 + $0x58] sm:$0xff] %vm638_vm2, %v617_v29  ;;  %v616_v32 = vsel %vm605_vm1, %v434_v39, %v530_v31 }
 0x107   : > { %649 = vst.msk [vmem:[%s1420_s28 + $0x50] sm:$0xff] %vm638_vm2, %v616_v32 }
 0x108   : > { %v536_v34 = vpop.permute.xlu1 %535 }
 0x109   : > { %v619_v35 = vsel %vm605_vm1, %v440_v42, %v536_v34  ;;  %v534_v37 = vpop.permute.xlu0 %533 }
 0x10a   : > { %652 = vst.msk [vmem:[%s1420_s28 + $0x68] sm:$0xff] %vm638_vm2, %v619_v35  ;;  %v618_v38 = vsel %vm605_vm1, %v1379_v45, %v534_v37 }
 0x10b   : > { %651 = vst.msk [vmem:[%s1420_s28 + $0x60] sm:$0xff] %vm638_vm2, %v618_v38 }
 0x10c   : > { %v540_v40 = vpop.permute.xlu1 %539 }
 0x10d   : > { %v621_v41 = vsel %vm605_vm1, %v1381_v46, %v540_v40  ;;  %v538_v43 = vpop.permute.xlu0 %537 }
 0x10e   : > { %654 = vst.msk [vmem:[%s1420_s28 + $0x78] sm:$0xff] %vm638_vm2, %v621_v41  ;;  %v620_v44 = vsel %vm605_vm1, %v1383_v47, %v538_v43 }
 0x10f   : > { %653 = vst.msk [vmem:[%s1420_s28 + $0x70] sm:$0xff] %vm638_vm2, %v620_v44 }
 0x110   : > { %v544_v10 = vpop.permute.xlu1 %543 }
 0x111   : > { %v623_v11 = vsel %vm605_vm1, %v1385_v48, %v544_v10  ;;  %v542_v12 = vpop.permute.xlu0 %541 }
 0x112   : > { %656 = vst.msk [vmem:[%s1420_s28 + $0x88] sm:$0xff] %vm638_vm2, %v623_v11  ;;  %v622_v15 = vsel %vm605_vm1, %v1387_v49, %v542_v12 }
 0x113   : > { %655 = vst.msk [vmem:[%s1420_s28 + $0x80] sm:$0xff] %vm638_vm2, %v622_v15 }
 0x114   : > { %v548_v18 = vpop.permute.xlu1 %547 }
 0x115   : > { %v625_v21 = vsel %vm605_vm1, %v1389_v50, %v548_v18  ;;  %v546_v24 = vpop.permute.xlu0 %545 }
 0x116   : > { %658 = vst.msk [vmem:[%s1420_s28 + $0x98] sm:$0xff] %vm638_vm2, %v625_v21  ;;  %v624_v27 = vsel %vm605_vm1, %v1391_v51, %v546_v24 }
 0x117   : > { %657 = vst.msk [vmem:[%s1420_s28 + $0x90] sm:$0xff] %vm638_vm2, %v624_v27 }
 0x118   : > { %v552_v30 = vpop.permute.xlu1 %551 }
 0x119   : > { %v627_v33 = vsel %vm605_vm1, %v1393_v52, %v552_v30  ;;  %v550_v36 = vpop.permute.xlu0 %549 }
 0x11a   : > { %660 = vst.msk [vmem:[%s1420_s28 + $0xa8] sm:$0xff] %vm638_vm2, %v627_v33  ;;  %v626_v39 = vsel %vm605_vm1, %v1395_v53, %v550_v36 }
 0x11b   : > { %659 = vst.msk [vmem:[%s1420_s28 + $0xa0] sm:$0xff] %vm638_vm2, %v626_v39 }
 0x11c   : > { %v556_v42 = vpop.permute.xlu1 %555 }
 0x11d   : > { %v629_v45 = vsel %vm605_vm1, %v1397_v54, %v556_v42  ;;  %v554_v46 = vpop.permute.xlu0 %553 }
 0x11e   : > { %662 = vst.msk [vmem:[%s1420_s28 + $0xb8] sm:$0xff] %vm638_vm2, %v629_v45  ;;  %v628_v47 = vsel %vm605_vm1, %v1399_v55, %v554_v46 }
 0x11f   : > { %661 = vst.msk [vmem:[%s1420_s28 + $0xb0] sm:$0xff] %vm638_vm2, %v628_v47 }
 0x120   : > { %v560_v48 = vpop.permute.xlu1 %559 }
 0x121   : > { %v631_v49 = vsel %vm605_vm1, %v1401_v56, %v560_v48  ;;  %v558_v50 = vpop.permute.xlu0 %557 }
 0x122   : > { %664 = vst.msk [vmem:[%s1420_s28 + $0xc8] sm:$0xff] %vm638_vm2, %v631_v49  ;;  %v630_v51 = vsel %vm605_vm1, %v1403_v57, %v558_v50 }
 0x123   : > { %663 = vst.msk [vmem:[%s1420_s28 + $0xc0] sm:$0xff] %vm638_vm2, %v630_v51 }
 0x124   : > { %v564_v52 = vpop.permute.xlu1 %563 }
 0x125   : > { %v633_v53 = vsel %vm605_vm1, %v1405_v58, %v564_v52  ;;  %v562_v54 = vpop.permute.xlu0 %561 }
 0x126   : > { %666 = vst.msk [vmem:[%s1420_s28 + $0xd8] sm:$0xff] %vm638_vm2, %v633_v53  ;;  %v632_v55 = vsel %vm605_vm1, %v1407_v59, %v562_v54 }
 0x127   : > { %665 = vst.msk [vmem:[%s1420_s28 + $0xd0] sm:$0xff] %vm638_vm2, %v632_v55 }
 0x128   : > { %v568_v56 = vpop.permute.xlu1 %567 }
 0x129   : > { %v635_v57 = vsel %vm605_vm1, %v1409_v60, %v568_v56  ;;  %v566_v0 = vpop.permute.xlu0 %565 }
 0x12a   : > { %668 = vst.msk [vmem:[%s1420_s28 + $0xe8] sm:$0xff] %vm638_vm2, %v635_v57  ;;  %v634_v58 = vsel %vm605_vm1, %v1411_v61, %v566_v0 }
 0x12b   : > { %667 = vst.msk [vmem:[%s1420_s28 + $0xe0] sm:$0xff] %vm638_vm2, %v634_v58 }
 0x12c   : > { %v572_v1 = vpop.permute.xlu1 %571 }
 0x12d   : > { %v637_v2 = vsel %vm605_vm1, %v1413_v62, %v572_v1  ;;  %v570_v3 = vpop.permute.xlu0 %569 }
 0x12e   : > { %670 = vst.msk [vmem:[%s1420_s28 + $0xf8] sm:$0xff] %vm638_vm2, %v637_v2  ;;  %v636_v59 = vsel %vm605_vm1, %v1417_v63, %v570_v3 }
 0x12f   : > { %669 = vst.msk [vmem:[%s1420_s28 + $0xf0] sm:$0xff] %vm638_vm2, %v636_v59 }
 0x130   : > { %s830_s5 = sshll.u32 %s1010_s12, 9  ;;  %s699_s21 = sshll.u32 %s1420_s28, 4  ;;  %s700_s21 = int_to_ptr.vmem [resolvable:$true] %s699_s21 }
 0x131   : > { %s688_s18 = scalar_lea.hbm %s1589_s1, %s830_s5  ;;  %s1028_s24 = smov 512  }
 0x132   : > { %840 = sst [smem:[#allocation9]] (%p1121_p0), %s1028_s24  ;;  %s1029_s27 = smov 2048  }
 0x133   : > { %841 = sst [smem:[#allocation9 + $0x1]] (%p1121_p0), %s1029_s27  ;;  %s1030_s2 = smov 4  }
 0x134   : > { %842 = sst [smem:[#allocation9 + $0x2]] (%p1121_p0), %s1030_s2  ;;  %s1031_s29 = smov 128  }
 0x135   : > { %843 = sst [smem:[#allocation9 + $0x3]] (%p1121_p0), %s1031_s29  ;;  %s1032_s12 = smov 8  }
 0x136   : > { %844 = sst [smem:[#allocation9 + $0x4]] (%p1121_p0), %s1031_s29  ;;  %s1033_s3 = smov 131072  }
 0x137   : > { %845 = sst [smem:[#allocation9 + $0x5]] (%p1121_p0), %s1032_s12  ;;  %s1034_s25 = smov 0  }
 0x138   : > { %846 = dma.general (%p1121_p0), %s700_s21, 4096, %s688_s18, %s672_s26, %s1033_s3, [#allocation9], %s1034_s25, 0  }
 0x139 PF: > { %p852_p3 = scmp.ge.s32.totalorder %s1018_s14, 2  ;;  %s727_s30 = sand.u32 1, %s986_s6  }
 0x13a   : > { %s728_s15 = scalar_lea.sflag [#allocation4], %s727_s30 }
 0x13b   : > { %p849_p7 = pnand %p852_p3, %p1132_p2 }
 0x13d   : > { %p850_p9 = pneg %p849_p7 }
 0x13f   : > { %981 = dma.done.wait (%p850_p9), %s728_s15, 4096  }
 0x140   : > { %983 = vsyncadd (%p850_p9), %s728_s15, 4294963200  ;;  %s17_s14 = sadd.s32 1, %s1018_s14   ;;  %s1594_s6 = smov %s990_s7 }
 0x141   : > { %p14_p10 = scmp.ge.s32.totalorder %s17_s14, 6   ;;  %s1595_s7 = smov %s994_s8 }
 0x142   : > { %s1596_s8 = smov %s1115_s4  ;;  %s1597_s9 = smov %s1002_s10 }
 0x143   : > { %s1598_s10 = smov %s1006_s11  ;;  %s1599_s11 = smov %s1130_s17 }
 0x144   : > { %s1600_s12 = smov %s1014_s13  ;;  %s1601_s13 = smov %s1094_s20 }
 0x145   :  { %16 = sbr.rel (!%p14_p10) target bundleno = 8 (0x8), region = 79 }
 0x14a   :  { %733 = vsyncpa [#allocation3], 1 }
 0x14b   :  { %735 = vsyncpa [#allocation3 + $0x1], 1 }
 0x14c   :  { %736 = vsyncpa [#allocation4], 1 }
 0x14d   :  { %738 = vsyncpa [#allocation4 + $0x1], 1 }

</bundles_post_ra>
